<compile_context>
chip_gen: v5e
topology: v5e:2x2
jax: 0.10.0
libtpu: 0.0.40
codegen_flags: <defaults>
</compile_context>

<pallas_src>
import functools

import jax
import jax.numpy as jnp
from jax.experimental import pallas as pl
from jax.experimental.pallas import tpu as pltpu

MARGIN = 2.0
EPS = 1e-6  # F.pairwise_distance default eps (added to the difference)


def _contrastive_loss_kernel(o1_ref, o2_ref, label_ref, out_ref,
                             *, batch, tile_b, tiles_per_slice):
    p = pl.program_id(0)   # slice index ("parallel" axis)
    j = pl.program_id(1)   # tile-within-slice index ("arbitrary" reduction axis)
    tile_idx = p * tiles_per_slice + j   # un-clamped global tile index

    # Per-slice partial-sum block is resident across the j axis -> zero-init it
    # on the first step of each slice.
    @pl.when(j == 0)
    def _():
        out_ref[...] = jnp.zeros_like(out_ref)

    o1 = o1_ref[...].astype(jnp.float32)           # (TB, D)
    o2 = o2_ref[...].astype(jnp.float32)           # (TB, D)
    label = label_ref[...].astype(jnp.float32)     # (TB, 1)

    # pairwise_distance: norm of (x1 - x2 + eps) along the feature (lane) axis.
    diff = o1 - o2 + EPS                                            # VPU
    sum_sq = jnp.sum(diff * diff, axis=-1, keepdims=True)           # (TB, 1) XLU reduce
    dist = jnp.sqrt(sum_sq)                                         # EUP
    margin_term = jnp.maximum(MARGIN - dist, 0.0)                   # clamp(margin - d, 0)
    loss_per_row = (1.0 - label) * sum_sq + label * (margin_term * margin_term)

    # Mask rows past the true batch end. This also zeroes whole tiles whose
    # global index is past the last real tile (their index_map was clamped to a
    # valid block, but tile_idx * tile_b >= batch so every row is masked).
    row = tile_idx * tile_b + jax.lax.broadcasted_iota(
        jnp.int32, loss_per_row.shape, 0)
    loss_per_row = jnp.where(row < batch, loss_per_row, 0.0)

    # Accumulate the un-normalized tile sum into the resident per-slice block
    # (scalar broadcast over the lane-dense (1, 8, 128) block is trivial VPU work).
    out_ref[...] = out_ref[...] + jnp.sum(loss_per_row)


def contrastive_loss(output1, output2, label):
    """output1, output2: (B, D); label: (B, 1). Returns scalar float32 loss."""
    B, D = output1.shape
    in_itemsize = jnp.dtype(output1.dtype).itemsize
    label_itemsize = jnp.dtype(label.dtype).itemsize

    # --- Batch-tile sizing -------------------------------------------------
    # Double-buffered per-row bytes:
    #   o1 + o2 : 2 arrays x 2 buffers x D x itemsize
    #   label   : 2 buffers x 128 lanes (lane padding of the (tb, 1) block)
    per_row_bytes = 2 * 2 * D * in_itemsize + 2 * 128 * label_itemsize
    vmem_budget = 20 * 1024 * 1024           # input double-buffer budget
    tb_cap = max(8, (vmem_budget // per_row_bytes) // 8 * 8)
    b_rounded = ((B + 7) // 8) * 8
    tb = min(tb_cap, b_rounded)

    # --- Grid: (slices, tiles-per-slice) ------------------------------------
    # Leading "parallel" axis -> per-slice partial sums (dual-TC on v7x);
    # trailing "arbitrary" axis -> in-slice streaming reduction.
    nt_total = pl.cdiv(B, tb)
    num_slices = 2 if nt_total >= 2 else 1
    tiles_per_slice = pl.cdiv(nt_total, num_slices)
    grid = (num_slices, tiles_per_slice)

    last_tile = nt_total - 1

    def in_map(p, j):
        # Clamp so out-of-range (empty) trailing tiles of a slice re-read a
        # valid block instead of issuing an OOB DMA; the kernel masks them out.
        return (jnp.minimum(p * tiles_per_slice + j, last_tile), 0)

    kernel = functools.partial(
        _contrastive_loss_kernel,
        batch=B, tile_b=tb, tiles_per_slice=tiles_per_slice)

    cost = pl.CostEstimate(
        flops=int(B * (4 * D + 8)),
        transcendentals=int(B),
        bytes_accessed=int(2 * B * D * in_itemsize + B * label_itemsize
                           + num_slices * 8 * 128 * 4),
    )

    partials = pl.pallas_call(
        kernel,
        # Per-slice partial sums in a (num_slices, 8, 128) f32 slab: the last
        # two dims of each (1, 8, 128) block are a full (8, 128) tile, so the
        # output stores are unmasked and layout-legal on all generations.
        out_shape=jax.ShapeDtypeStruct((num_slices, 8, 128), jnp.float32),
        grid_spec=pltpu.PrefetchScalarGridSpec(
            num_scalar_prefetch=0,
            grid=grid,
            in_specs=[
                pl.BlockSpec((tb, D), in_map),
                pl.BlockSpec((tb, D), in_map),
                pl.BlockSpec((tb, 1), in_map),
            ],
            out_specs=pl.BlockSpec((1, 8, 128), lambda p, j: (p, 0, 0)),
        ),
        compiler_params=pltpu.CompilerParams(
            # Slices are independent (per-slice output blocks) -> "parallel"
            # shards them across TensorCores on v7x; the in-slice reduction
            # axis must stay "arbitrary".
            dimension_semantics=("parallel", "arbitrary"),
            # Explicit scoped-VMEM limit: covers the ~20 MiB input
            # double-buffers + output blocks with headroom; raises v5e's
            # 16 MiB default and stays under v7x's 64 MiB physical VMEM.
            vmem_limit_bytes=28 * 1024 * 1024,
        ),
        cost_estimate=cost,
    )(output1, output2, label)

    # Every element of slice p's block holds that slice's un-normalized sum.
    return jnp.sum(partials[:, 0, 0]) / B


def contrastive_loss_ref(output1, output2, label):
    """Pure-JAX reference for sanity checking."""
    diff = output1.astype(jnp.float32) - output2.astype(jnp.float32) + EPS
    d = jnp.sqrt(jnp.sum(diff * diff, axis=-1, keepdims=True))
    lbl = label.astype(jnp.float32)
    loss = (1.0 - lbl) * d ** 2 + lbl * jnp.maximum(MARGIN - d, 0.0) ** 2
    return jnp.mean(loss)


if __name__ == "__main__":
    key = jax.random.PRNGKey(0)
    k1, k2, k3 = jax.random.split(key, 3)

    B, D = 8, 32
    output1 = jax.random.normal(k1, (B, D), dtype=jnp.float32)
    output2 = jax.random.normal(k2, (B, D), dtype=jnp.float32)
    # Binary similarity labels in {0, 1}, shape (B, 1).
    label = jax.random.bernoulli(k3, p=0.5, shape=(B, 1)).astype(jnp.float32)

    loss = contrastive_loss(output1, output2, label)
    loss = jax.block_until_ready(loss)

    ref = contrastive_loss_ref(output1, output2, label)
    assert jnp.allclose(loss, ref, rtol=1e-5, atol=1e-5), (loss, ref)

    print("KERNEL_OK")
</pallas_src>

<mosaic_0001>
module attributes {stable_mosaic.version = 11 : i64} {
  func.func @_contrastive_loss_kernel(%arg0: i32, %arg1: i32, %arg2: memref<8x32xf32, #tpu.memory_space<vmem>>, %arg3: memref<8x32xf32, #tpu.memory_space<vmem>>, %arg4: memref<8x1xf32, #tpu.memory_space<vmem>>, %arg5: memref<1x8x128xf32, #tpu.memory_space<vmem>>) attributes {dimension_semantics = [#tpu.dimension_semantics<parallel>, #tpu.dimension_semantics<arbitrary>], iteration_bounds = array<i64: 1, 1>, scalar_prefetch = 0 : i64, scratch_operands = 0 : i64, tpu.core_type = #tpu.core_type<tc>, window_params = [{transform_indices = @transform_0, window_bounds = array<i64: 8, 32>}, {transform_indices = @transform_1, window_bounds = array<i64: 8, 32>}, {transform_indices = @transform_2, window_bounds = array<i64: 8, 1>}, {transform_indices = @transform_3, window_bounds = array<i64: 1, 8, 128>}]} {
    %c1_i32 = arith.constant 1 : i32
    %0 = arith.muli %arg0, %c1_i32 : i32
    %1 = arith.addi %0, %arg1 : i32
    %c0_i32 = arith.constant 0 : i32
    %2 = arith.cmpi eq, %arg1, %c0_i32 : i32
    %3 = arith.extui %2 : i1 to i32
    %c0_i32_0 = arith.constant 0 : i32
    %4 = arith.cmpi ne, %3, %c0_i32_0 : i32
    scf.if %4 {
      %cst_19 = arith.constant 0.000000e+00 : f32
      %41 = vector.broadcast %cst_19 : f32 to vector<1x8x128xf32>
      %c0_20 = arith.constant 0 : index
      %c0_21 = arith.constant 0 : index
      %c0_22 = arith.constant 0 : index
      %42 = vector.load %arg5[%c0_20, %c0_21, %c0_22] : memref<1x8x128xf32, #tpu.memory_space<vmem>>, vector<1x8x128xf32>
      tpu.vector_store %arg5[%c0_20, %c0_21, %c0_22], %41 {strides = array<i32>} : memref<1x8x128xf32, #tpu.memory_space<vmem>>, vector<1x8x128xf32>,
    } else {
    }
    %c0 = arith.constant 0 : index
    %c0_1 = arith.constant 0 : index
    %5 = vector.load %arg2[%c0, %c0_1] : memref<8x32xf32, #tpu.memory_space<vmem>>, vector<8x32xf32>
    %c0_2 = arith.constant 0 : index
    %c0_3 = arith.constant 0 : index
    %6 = vector.load %arg3[%c0_2, %c0_3] : memref<8x32xf32, #tpu.memory_space<vmem>>, vector<8x32xf32>
    %c0_4 = arith.constant 0 : index
    %c0_5 = arith.constant 0 : index
    %7 = vector.load %arg4[%c0_4, %c0_5] : memref<8x1xf32, #tpu.memory_space<vmem>>, vector<8x1xf32>
    %8 = arith.subf %5, %6 : vector<8x32xf32>
    %cst = arith.constant 9.99999997E-7 : f32
    %9 = vector.broadcast %cst : f32 to vector<8x32xf32>
    %10 = arith.addf %8, %9 : vector<8x32xf32>
    %11 = arith.mulf %10, %10 : vector<8x32xf32>
    %cst_6 = arith.constant dense<0.000000e+00> : vector<8xf32>
    %12 = vector.multi_reduction <add>, %11, %cst_6 [1] : vector<8x32xf32> to vector<8xf32>
    %13 = vector.shape_cast %12 : vector<8xf32> to vector<8x1xf32>
    %14 = math.sqrt %13 : vector<8x1xf32>
    %cst_7 = arith.constant 2.000000e+00 : f32
    %15 = vector.broadcast %cst_7 : f32 to vector<8x1xf32>
    %16 = arith.subf %15, %14 : vector<8x1xf32>
    %cst_8 = arith.constant 0.000000e+00 : f32
    %17 = vector.broadcast %cst_8 : f32 to vector<8x1xf32>
    %18 = arith.maximumf %16, %17 : vector<8x1xf32>
    %cst_9 = arith.constant 1.000000e+00 : f32
    %19 = vector.broadcast %cst_9 : f32 to vector<8x1xf32>
    %20 = arith.subf %19, %7 : vector<8x1xf32>
    %21 = arith.mulf %20, %13 : vector<8x1xf32>
    %22 = arith.mulf %18, %18 : vector<8x1xf32>
    %23 = arith.mulf %7, %22 : vector<8x1xf32>
    %24 = arith.addf %21, %23 : vector<8x1xf32>
    %c8_i32 = arith.constant 8 : i32
    %25 = arith.muli %1, %c8_i32 : i32
    %26 = tpu.iota {dimensions = array<i32: 0>} : vector<8x1xi32>
    %27 = vector.broadcast %25 : i32 to vector<8x1xi32>
    %28 = arith.addi %27, %26 : vector<8x1xi32>
    %c8_i32_10 = arith.constant 8 : i32
    %29 = vector.broadcast %c8_i32_10 : i32 to vector<8x1xi32>
    %30 = arith.cmpi slt, %28, %29 : vector<8x1xi32>
    %cst_11 = arith.constant 0.000000e+00 : f32
    %31 = vector.broadcast %cst_11 : f32 to vector<8x1xf32>
    %32 = arith.select %30, %24, %31 : vector<8x1xi1>, vector<8x1xf32>
    %c0_12 = arith.constant 0 : index
    %c0_13 = arith.constant 0 : index
    %c0_14 = arith.constant 0 : index
    %33 = vector.load %arg5[%c0_12, %c0_13, %c0_14] : memref<1x8x128xf32, #tpu.memory_space<vmem>>, vector<1x8x128xf32>
    %34 = vector.shape_cast %32 : vector<8x1xf32> to vector<1x8x1xf32>
    %cst_15 = arith.constant dense<0.000000e+00> : vector<1xf32>
    %35 = vector.multi_reduction <add>, %34, %cst_15 [1, 2] : vector<1x8x1xf32> to vector<1xf32>
    %36 = vector.shape_cast %35 : vector<1xf32> to vector<1x1x1xf32>
    %37 = vector.extract %36[0, 0, 0] : f32 from vector<1x1x1xf32>
    %38 = vector.broadcast %37 : f32 to vector<1x8x128xf32>
    %39 = arith.addf %33, %38 : vector<1x8x128xf32>
    %c0_16 = arith.constant 0 : index
    %c0_17 = arith.constant 0 : index
    %c0_18 = arith.constant 0 : index
    %40 = vector.load %arg5[%c0_16, %c0_17, %c0_18] : memref<1x8x128xf32, #tpu.memory_space<vmem>>, vector<1x8x128xf32>
    tpu.vector_store %arg5[%c0_16, %c0_17, %c0_18], %39 {strides = array<i32>} : memref<1x8x128xf32, #tpu.memory_space<vmem>>, vector<1x8x128xf32>,
    return
  }
  func.func @transform_0(%arg0: i32, %arg1: i32) -> (i32, i32) {
    %c1_i32 = arith.constant 1 : i32
    %0 = arith.muli %arg0, %c1_i32 : i32
    %1 = arith.addi %0, %arg1 : i32
    %c0_i32 = arith.constant 0 : i32
    %2 = arith.minsi %1, %c0_i32 : i32
    %c0_i32_0 = arith.constant 0 : i32
    %c0_i32_1 = arith.constant 0 : i32
    return %2, %c0_i32_0 : i32, i32
  }
  func.func @transform_1(%arg0: i32, %arg1: i32) -> (i32, i32) {
    %c1_i32 = arith.constant 1 : i32
    %0 = arith.muli %arg0, %c1_i32 : i32
    %1 = arith.addi %0, %arg1 : i32
    %c0_i32 = arith.constant 0 : i32
    %2 = arith.minsi %1, %c0_i32 : i32
    %c0_i32_0 = arith.constant 0 : i32
    %c0_i32_1 = arith.constant 0 : i32
    return %2, %c0_i32_0 : i32, i32
  }
  func.func @transform_2(%arg0: i32, %arg1: i32) -> (i32, i32) {
    %c1_i32 = arith.constant 1 : i32
    %0 = arith.muli %arg0, %c1_i32 : i32
    %1 = arith.addi %0, %arg1 : i32
    %c0_i32 = arith.constant 0 : i32
    %2 = arith.minsi %1, %c0_i32 : i32
    %c0_i32_0 = arith.constant 0 : i32
    %c0_i32_1 = arith.constant 0 : i32
    return %2, %c0_i32_0 : i32, i32
  }
  func.func @transform_3(%arg0: i32, %arg1: i32) -> (i32, i32, i32) {
    %c0_i32 = arith.constant 0 : i32
    %c0_i32_0 = arith.constant 0 : i32
    %c0_i32_1 = arith.constant 0 : i32
    return %arg0, %c0_i32, %c0_i32_0 : i32, i32, i32
  }
}

</mosaic_0001>

<bundles_post_ra>
// kernel: tpu_custom_call.1
= control target key start
LH: loop header
LB: loop body
LE: loop exit
PB: predicated region body
PF: predicated region fallthrough
CT: control target
= control target key end

     0   :  { %8 = vsyncpa [#allocation3], 0  ;;  %s272_s0 = inlined_call_operand.vmem [shape: f32[8,32], index: 0, kind: input, shape index: {}]   ;;  %s273_s1 = inlined_call_operand.hbm [shape: f32[8,32], index: 1, kind: input, shape index: {}]   ;;  %s274_s2 = inlined_call_operand.vmem [shape: f32[8,1], index: 2, kind: input, shape index: {}]   ;;  %s275_s3 = inlined_call_operand.hbm [shape: f32[1,8,128], index: 3, kind: output, shape index: {}]  }
   0x1   :  { %9 = vsyncpa [#allocation4], 0  ;;  %s32_s14 = sshll.u32 %s273_s1, 4  ;;  %s238_s15 = smov [#allocation2]   ;;  %s33_s14 = int_to_ptr.hbm [resolvable:$true] %s32_s14 }
   0x2   :  { %s34_s16 = sshll.u32 %s238_s15, 4  ;;  %s35_s16 = int_to_ptr.vmem [resolvable:$true] %s34_s16 }
   0x3   :  { %37 = dma.hbm_to_vmem [thread:$0]  %s33_s14, 128, %s35_s16, [#allocation3]  }
   0x4   :  { %234 = dma.done.wait [#allocation3], 128  }
   0x5   :  { %235 = vsyncadd [#allocation3], 4294967168  ;;  %v97_v0 = vld [vmem:[%s272_s0] sm:$0xff]  ;;  %vm103_vm0 = vcmask 261120   ;;  %vm134_vm3 = vcmask 7168   ;;  %s155_s22 = sshll.u32 %s275_s3, 4  ;;  %s156_s22 = int_to_ptr.hbm [resolvable:$true] %s155_s22 }
   0x6   :  { %v98_v1 = vld [vmem:[#allocation2] sm:$0xff] }
   0x7   :  { %v100_v2 = vsub.f32 %v97_v0, %v98_v1  ;;  %v99_v16 = vld [vmem:[%s274_s2] sm:$0xff]  ;;  %s239_s2 = smov [#allocation5]  }
   0x8   :  { %v121_v20 = vsub.f32 1.0, %v99_v16  ;;  %s153_s19 = sshll.u32 %s239_s2, 4  ;;  %s154_s19 = int_to_ptr.vmem [resolvable:$true] %s153_s19 }
   0x9   :  { %v101_v3 = vadd.f32 1e-06, %v100_v2 }
   0xb   :  { %v102_v4 = vmul.f32 %v101_v3, %v101_v3 }
   0xd   :  { %v104_v5 = vsel %vm103_vm0, %v102_v4, 0.0 }
   0xe   :  { %105 = vadd.xlane.f32.xlu0 %v104_v5 }
  0x81   :  { %v106_v6 = vpop.xlane.xlu0 %105 }
  0x82   :  { %184 = vrsqrt.f32 %v106_v6  ;;  %vm114_vm1 = vcmp.eq.f32.partialorder %v106_v6, inf  ;;  %v117_v14 = vand.u32 2147483648, %v106_v6  ;;  %vm116_vm2 = vcmp.eq.f32.partialorder %v106_v6, 0.0 }
  0x83   :  { %v122_v22 = vmul.f32 %v121_v20, %v106_v6 }
  0x88   :  { %v185_v7 = vpop.eup %184 }
  0x89   :  { %v108_v8 = vmul.f32 %v185_v7, %v106_v6 }
  0x8b   :  { %v109_v9 = vmul.f32 %v185_v7, %v108_v8 }
  0x8d   :  { %v110_v10 = vmul.f32 0.5, %v109_v9 }
  0x8f   :  { %v111_v11 = vsub.f32 1.5, %v110_v10 }
  0x91   :  { %v112_v12 = vmul.f32 %v185_v7, %v111_v11 }
  0x93   :  { %v113_v13 = vmul.f32 %v112_v12, %v106_v6 }
  0x95   :  { %v115_v15 = vsel %vm114_vm1, %v106_v6, %v113_v13 }
  0x96   :  { %v118_v17 = vsel %vm116_vm2, %v117_v14, %v115_v15 }
  0x97   :  { %v119_v18 = vsub.f32 2.0, %v118_v17 }
  0x99   :  { %v120_v19 = vmax.f32 %v119_v18, 0.0 }
  0x9b   :  { %v123_v21 = vmul.f32 %v120_v19, %v120_v19 }
  0x9d   :  { %v124_v23 = vmul.f32 %v123_v21, %v99_v16 }
  0x9f   :  { %v125_v24 = vadd.f32 %v124_v23, %v122_v22 }
  0xa1   :  { %v135_v25 = vsel %vm134_vm3, %v125_v24, 0.0 }
  0xa2   :  { %136 = vadd.xlane.f32.xlu0 %v135_v25 }
 0x115   :  { %v137_v26 = vpop.xlane.xlu0 %136 }
 0x116   :  { %v138_v27 = vrot.slane %v137_v26, 4 }
 0x118   :  { %v139_v28 = vadd.f32 %v138_v27, %v137_v26 }
 0x11a   :  { %v140_v29 = vrot.slane %v139_v28, 2 }
 0x11c   :  { %v141_v30 = vadd.f32 %v140_v29, %v139_v28 }
 0x11e   :  { %v142_v31 = vrot.slane %v141_v30, 1 }
 0x120   :  { %v143_v32 = vadd.f32 %v142_v31, %v141_v30 }
 0x122   :  { %179 = vpush %v143_v32 }
 0x153   :  { %s180_s23 = spop %179 }
 0x154   :  { %v145_v33 = vstv %s180_s23 }
 0x155   :  { %147 = vst [vmem:[#allocation5] sm:$0xff] %v145_v33 }
 0x156   :  { %158 = dma.vmem_to_hbm [thread:$0]  %s154_s19, 128, %s156_s22, [#allocation4]  }
 0x157   :  { %236 = dma.done.wait [#allocation4], 128  }
 0x158   :  { %237 = vsyncadd [#allocation4], 4294967168 }
 0x159   :  { %163 = vsyncpa [#allocation3], 1 }
 0x15a   :  { %164 = vsyncpa [#allocation4], 1 }

</bundles_post_ra>
